<compile_context>
chip_gen: v6e
topology: v6e:2x2x1
jax: 0.10.0
libtpu: 0.0.40
codegen_flags: <defaults>
</compile_context>

<pallas_src>
import functools
import math

import numpy as np
import jax
import jax.numpy as jnp
from jax import lax
from jax.experimental import pallas as pl
from jax.experimental.pallas import tpu as pltpu


_VMEM = functools.partial(pl.BlockSpec, memory_space=pltpu.MemorySpace.VMEM)


def _relu(x):
    return jnp.maximum(x, 0.0)


# ---------------------------------------------------------------------------
# Single fused kernel.
# ---------------------------------------------------------------------------
def wavenet_kernel(x_ref, stat_ref, pack_ref, out_ref, *, B, L, meta):
    f32 = jnp.float32
    dil = meta["dil"]
    half = meta["half"]
    c1in, c1, c2 = meta["c1in"], meta["c1"], meta["c2"]
    L1 = L - dil
    BL = B * L
    slots = meta["slots"]

    def W(name):                               # static, 8-aligned pack slice
        r0, nr, nc = slots[name]
        return pack_ref[r0:r0 + nr, :nc]

    def dot(a, b):
        return jnp.dot(a, b, preferred_element_type=f32)

    # row-vector biases for the channel-last conv stack (loaded once)
    brow = W("brow")
    b1, b2, bt = brow[0:1, :c1], brow[1:2, :c2], brow[2:3, :c2]

    # ---- fold batch into rows, channel-last: X (B*L, c1in) ------------------
    # PyTorch NCL (B, C, L) -> per-batch 2-D transpose (XLU) + sublane concat.
    X = jnp.concatenate([x_ref[n].T for n in range(B)], axis=0)

    # per-row time index within its batch block (dilation validity masks)
    l_idx = lax.broadcasted_iota(jnp.int32, (BL, 1), 0) % L

    # ---- conv1 (k=2, dilation): both taps from ONE matmul -------------------
    P = dot(X, W("w1"))                                       # (BL, 2*c1)
    p1s = pltpu.roll(P[:, c1:], shift=BL - dil, axis=0)       # p1s[f] = p1[f+dil]
    h1 = _relu(P[:, :c1] + p1s + b1)                          # rows l>=L1 garbage (masked later)

    # ---- conv2 (k=1): pointwise channel matmul ------------------------------
    h2 = _relu(dot(h1, W("w2")) + b2)                         # (BL, c2)

    # ---- conv_transpose (k=2, dilation): one matmul, roll+mask shift-add ----
    # output channels pre-permuted (even || odd) for the decoder fold below
    Z = dot(h2, W("wt"))                                      # (BL, 2*c2)
    z1s = pltpu.roll(Z[:, c2:], shift=dil, axis=0)            # z1s[f] = z1[f-dil]
    y = _relu(jnp.where(l_idx < L1, Z[:, :c2], 0.0)
              + jnp.where(l_idx >= dil, z1s, 0.0) + bt)       # (BL, c2), valid all rows

    # ---- static encoder, transposed output (features x rows): A @ B^T -------
    menc = _relu(lax.dot_general(W("wenc"), stat_ref[...],
                                 (((1,), (1,)), ((), ())),
                                 preferred_element_type=f32)
                 + W("benc"))                                 # (denc, BL)

    # ---- decoder layer 1 (transposed).  The PyTorch .view(N*L, C) of the NCL
    # conv_transpose output is folded into the contraction: per batch, dec_w's
    # ct columns contract over TIME against y's even/odd channel groups
    # (valid because out_cnn2_dim == 2*seq_len == 2*L, asserted in wrapper).
    wdec = W("wdec")
    wde, wdo, wdenc = wdec[:, :half], wdec[:, half:2 * half], wdec[:, 2 * half:]
    ec = dot(wdenc, menc)                                     # (ddec, BL)
    cts = [dot(wde, y[n * L:(n + 1) * L, :half])
           + dot(wdo, y[n * L:(n + 1) * L, half:]) for n in range(B)]
    ct = cts[0] if B == 1 else jnp.concatenate(cts, axis=1)   # (ddec, BL)
    h = _relu(ct + ec + W("bdec"))                            # (ddec, BL)

    # ---- interim + final dense layers (single tiny sublane matmuls) ---------
    for i in range(meta["n_interim"]):
        h = _relu(dot(W(f"wint{i}"), h) + W(f"bint{i}"))
    logit = dot(W("wfin"), h) + W("bfin")                     # (1, BL) lane-dense
    # sigmoid: exp on the EUP; exact reciprocal keeps 1e-4 parity with f32 ref
    out_ref[...] = pl.reciprocal(1.0 + jnp.exp(-logit), approx=False)


# ---------------------------------------------------------------------------
# One-time (numpy) parameter packing: every weight/bias into a single
# (rows, 128) f32 blob with 8-row-aligned slots.
# ---------------------------------------------------------------------------
def prepare_params(params, cfg):
    seq_len = cfg["seq_len"]
    dil = cfg["dilation"]
    c1, c1in, _ = params["conv1_w"].shape
    c2 = params["conv2_w"].shape[0]
    half = c2 // 2
    denc = params["enc_static_w"].shape[0]
    ddec = params["dec_w"].shape[0]
    assert c2 == 2 * half and half == seq_len, \
        "folded decoder layout requires out_cnn2_dim == 2*seq_len"

    perm = np.concatenate([np.arange(0, c2, 2), np.arange(1, c2, 2)])
    f = lambda a: np.asarray(a, np.float32)

    blocks = []
    blocks.append(("w1", np.concatenate([f(params["conv1_w"])[:, :, 0].T,
                                         f(params["conv1_w"])[:, :, 1].T], axis=1)))
    blocks.append(("w2", f(params["conv2_w"])[:, :, 0].T))
    blocks.append(("wt", np.concatenate([f(params["convT_w"])[:, perm, 0],
                                         f(params["convT_w"])[:, perm, 1]], axis=1)))
    blocks.append(("wenc", f(params["enc_static_w"])))
    blocks.append(("wdec", f(params["dec_w"])))
    fc_dims = []
    for i, (w, _) in enumerate(params["dec_interim"]):
        blocks.append((f"wint{i}", f(w)))
        fc_dims.append((f(w).shape[1], f(w).shape[0]))
    blocks.append(("wfin", f(params["dec_final_w"])))
    fc_dims.append((f(params["dec_final_w"]).shape[1], f(params["dec_final_w"]).shape[0]))

    brow = np.zeros((3, max(c1, c2)), np.float32)       # row-vector conv biases
    brow[0, :c1] = f(params["conv1_b"])
    brow[1, :c2] = f(params["conv2_b"])
    brow[2, :c2] = f(params["convT_b"])[perm]
    blocks.append(("brow", brow))
    blocks.append(("benc", f(params["enc_static_b"])[:, None]))    # column biases
    blocks.append(("bdec", f(params["dec_b"])[:, None]))
    for i, (_, b) in enumerate(params["dec_interim"]):
        blocks.append((f"bint{i}", f(b)[:, None]))
    blocks.append(("bfin", f(params["dec_final_b"])[:, None]))

    max_w = max(arr.shape[1] for _, arr in blocks)
    lanes = max(128, -(-max_w // 128) * 128)
    slots, off = {}, 0
    for name, arr in blocks:
        slots[name] = (off, arr.shape[0], arr.shape[1])
        off += -(-arr.shape[0] // 8) * 8                # 8-sublane alignment
    pack = np.zeros((max(8, -(-off // 8) * 8), lanes), np.float32)
    for name, arr in blocks:
        r0, nr, nc = slots[name]
        pack[r0:r0 + nr, :nc] = arr

    meta = dict(slots=slots, dil=dil, half=half, seq_len=seq_len,
                c1in=c1in, c1=c1, c2=c2, denc=denc, ddec=ddec,
                n_interim=len(params["dec_interim"]), fc_dims=fc_dims)
    return jnp.asarray(pack), meta


# ---------------------------------------------------------------------------
# Forward pass: plain-JAX glue on raw inputs (gathers / concats / reshapes),
# everything after that in one fused Pallas kernel.
# ---------------------------------------------------------------------------
def forward_pallas(pack, emb_tmpl_tables, emb_static_tables,
                   mlp_static_data, mlp_tmpl_data, emb_static_data, emb_tmpl_data,
                   *, meta):
    B, L, _ = mlp_tmpl_data.shape
    seq_len = meta["seq_len"]
    assert L == seq_len and meta["half"] == seq_len, \
        "folded decoder layout requires seq_len == temporal length"
    assert (B * L) % (2 * seq_len) == 0

    # MultiEmbedding + exact PyTorch .view(B*L, F) flattenings (plain-JAX glue)
    emb_static_flat = emb_static_data.reshape(B * L, emb_static_data.shape[2])
    mlp_static_flat = mlp_static_data.reshape(B * L, mlp_static_data.shape[2])
    emb_temporal = jnp.concatenate(
        [tbl[emb_tmpl_data[..., i]] for i, tbl in enumerate(emb_tmpl_tables)], axis=-1)
    emb_static = jnp.concatenate(
        [tbl[emb_static_flat[:, i]] for i, tbl in enumerate(emb_static_tables)], axis=-1)
    stat_in = jnp.concatenate([mlp_static_flat, emb_static], axis=1)      # (B*L, Fs)
    enc_data = jnp.concatenate([mlp_tmpl_data, emb_temporal], axis=2)     # (B, L, c1in)
    # PyTorch enc_data.view(-1, C, L): raw reinterpretation -> free reshape
    x_ncl = enc_data.reshape(B, meta["c1in"], L)

    # advisory cost estimate (kernel is launch/DMA-overhead dominated)
    c1in, c1, c2 = meta["c1in"], meta["c1"], meta["c2"]
    denc, ddec, half = meta["denc"], meta["ddec"], meta["half"]
    fs = stat_in.shape[1]
    flops = 2 * B * L * (c1in * 2 * c1 + c1 * c2 + c2 * 2 * c2
                         + fs * denc + denc * ddec + 2 * half * ddec)
    for (fin, fout) in meta["fc_dims"]:
        flops += 2 * B * L * fin * fout
    bytes_acc = 4 * (x_ncl.size + stat_in.size + pack.size + B * L)

    kernel = functools.partial(wavenet_kernel, B=B, L=L, meta=meta)
    out = pl.pallas_call(
        kernel,
        out_shape=jax.ShapeDtypeStruct((1, B * L), jnp.float32),
        in_specs=[_VMEM(), _VMEM(), _VMEM()],
        out_specs=_VMEM(),
        cost_estimate=pl.CostEstimate(flops=int(flops), transcendentals=B * L,
                                      bytes_accessed=int(bytes_acc)),
    )(x_ncl, stat_in, pack)
    # PyTorch: preds.view(-1, 2*seq_len)  (free metadata reshape here)
    return out.reshape(-1, 2 * seq_len)


# ---------------------------------------------------------------------------
# Independent pure-JAX reference (straightforward NCL convs + Linear stack),
# used only to validate the Pallas kernel's restructured math.
# ---------------------------------------------------------------------------
def forward_reference(params, mlp_static_data, mlp_tmpl_data,
                      emb_static_data, emb_tmpl_data, *, cfg):
    B, L, _ = mlp_tmpl_data.shape
    dil = cfg["dilation"]
    L1 = L - dil
    emb_static_flat = emb_static_data.reshape(B * L, emb_static_data.shape[2])
    mlp_static_flat = mlp_static_data.reshape(B * L, mlp_static_data.shape[2])
    emb_temporal = jnp.concatenate(
        [tbl[emb_tmpl_data[..., i]] for i, tbl in enumerate(params["emb_tmpl"])],
        axis=-1)
    emb_static = jnp.concatenate(
        [tbl[emb_static_flat[:, i]] for i, tbl in enumerate(params["emb_static"])],
        axis=-1)
    stat_in = jnp.concatenate([mlp_static_flat, emb_static], axis=1)
    mlp_enc = _relu(stat_in @ params["enc_static_w"].T + params["enc_static_b"])

    enc_data = jnp.concatenate([mlp_tmpl_data, emb_temporal], axis=2)
    c1in = enc_data.shape[2]
    x_ncl = enc_data.reshape(B, c1in, L)            # PyTorch .view(-1, C, L)
    h1 = _relu(jnp.einsum('bcl,oc->bol', x_ncl[:, :, :L1], params["conv1_w"][:, :, 0])
               + jnp.einsum('bcl,oc->bol', x_ncl[:, :, dil:], params["conv1_w"][:, :, 1])
               + params["conv1_b"][None, :, None])
    h2 = _relu(jnp.einsum('bcl,oc->bol', h1, params["conv2_w"][:, :, 0])
               + params["conv2_b"][None, :, None])
    z0 = jnp.einsum('bcl,co->bol', h2, params["convT_w"][:, :, 0])
    z1 = jnp.einsum('bcl,co->bol', h2, params["convT_w"][:, :, 1])
    c2 = z0.shape[1]
    y = jnp.zeros((B, c2, L), jnp.float32)
    y = y.at[:, :, :L1].add(z0)
    y = y.at[:, :, dil:].add(z1)
    y = _relu(y + params["convT_b"][None, :, None])
    ct_view = y.reshape(B * L, c2)                  # PyTorch .view(N*L, C)
    dec_in = jnp.concatenate([ct_view, mlp_enc], axis=1)
    h = _relu(dec_in @ params["dec_w"].T + params["dec_b"])
    for (w, b) in params["dec_interim"]:
        h = _relu(h @ w.T + b)
    logit = h @ params["dec_final_w"].T + params["dec_final_b"]
    preds = 1.0 / (1.0 + jnp.exp(-logit))
    return preds.reshape(-1, 2 * cfg["seq_len"])


if __name__ == "__main__":
    # ---- configuration (mirrors Neural_Network_wavenet.__init__ formulas) ----
    seq_len = 16
    B = 2
    emb_tmpl_list_inp = [11, 7]
    emb_tmpl_list_out = [4, 6]
    emb_static_list_inp = [40, 30]
    emb_static_list_out = [8, 8]
    mlp_tmpl_id = 8
    mlp_static_id = 16

    in_enc_stat_dim = mlp_static_id + sum(emb_static_list_out)                        # 32
    out_enc_stat_dim = 2 ** int(math.log(mlp_static_id + sum(emb_static_list_inp), 2))  # 64
    in_cnn1_dim = mlp_tmpl_id + sum(emb_tmpl_list_out)                                # 18
    out_cnn1_dim = 2 ** int(math.log(in_cnn1_dim, 2))                                 # 16
    in_cnn2_dim = out_cnn1_dim
    out_cnn2_dim = 2 * seq_len                                                        # 32
    in_dec_dim = out_enc_stat_dim + 2 * seq_len                                       # 96
    out_dec_dim = 2 ** int(math.log(out_enc_stat_dim + out_cnn2_dim, 2)) // 4         # 16
    num_fc_layers = int(math.log(out_dec_dim, 2) // 4)                                # 1

    # ---- deterministic parameter init ----
    key = jax.random.PRNGKey(0)
    keys = iter(jax.random.split(key, 64))

    def nrm(shape, fan_in):
        return jax.random.normal(next(keys), shape, jnp.float32) / math.sqrt(fan_in)

    params = {
        "emb_tmpl": [nrm((emb_tmpl_list_inp[i], emb_tmpl_list_out[i]), 1.0)
                     for i in range(len(emb_tmpl_list_inp))],
        "emb_static": [nrm((emb_static_list_inp[i], emb_static_list_out[i]), 1.0)
                       for i in range(len(emb_static_list_inp))],
        "enc_static_w": nrm((out_enc_stat_dim, in_enc_stat_dim), in_enc_stat_dim),
        "enc_static_b": nrm((out_enc_stat_dim,), in_enc_stat_dim),
        "conv1_w": nrm((out_cnn1_dim, in_cnn1_dim, 2), in_cnn1_dim * 2),
        "conv1_b": nrm((out_cnn1_dim,), in_cnn1_dim * 2),
        "conv2_w": nrm((out_cnn2_dim, in_cnn2_dim, 1), in_cnn2_dim),
        "conv2_b": nrm((out_cnn2_dim,), in_cnn2_dim),
        "convT_w": nrm((out_cnn2_dim, out_cnn2_dim, 2), out_cnn2_dim * 2),
        "convT_b": nrm((out_cnn2_dim,), out_cnn2_dim * 2),
        "dec_w": nrm((out_dec_dim, in_dec_dim), in_dec_dim),
        "dec_b": nrm((out_dec_dim,), in_dec_dim),
    }
    interim = []
    d = out_dec_dim
    for _ in range(num_fc_layers):
        interim.append((nrm((d // 4, d), d), nrm((d // 4,), d)))
        d = d // 4
    params["dec_interim"] = interim
    params["dec_final_w"] = nrm((1, d), d)    # PyTorch Linear(d, 1).weight shape
    params["dec_final_b"] = nrm((1,), d)

    cfg = {"seq_len": seq_len, "dilation": 2}

    # ---- deterministic example inputs ----
    mlp_static_data = jax.random.normal(next(keys), (B, seq_len, mlp_static_id), jnp.float32)
    mlp_tmpl_data = jax.random.normal(next(keys), (B, seq_len, mlp_tmpl_id), jnp.float32)
    emb_static_data = jnp.stack(
        [jax.random.randint(next(keys), (B, seq_len), 0, v) for v in emb_static_list_inp],
        axis=-1)
    emb_tmpl_data = jnp.stack(
        [jax.random.randint(next(keys), (B, seq_len), 0, v) for v in emb_tmpl_list_inp],
        axis=-1)

    # ---- one-time parameter packing (numpy, outside jit) ----
    pack, meta = prepare_params(params, cfg)

    # ---- run fused Pallas kernel + independent pure-JAX reference ----
    fwd = jax.jit(functools.partial(forward_pallas, meta=meta))
    ref_fn = jax.jit(functools.partial(forward_reference, cfg=cfg))

    preds = fwd(pack, params["emb_tmpl"], params["emb_static"],
                mlp_static_data, mlp_tmpl_data, emb_static_data, emb_tmpl_data)
    preds = jax.block_until_ready(preds)
    ref = ref_fn(params, mlp_static_data, mlp_tmpl_data, emb_static_data, emb_tmpl_data)
    ref = jax.block_until_ready(ref)

    assert preds.shape == (B * seq_len // (2 * seq_len), 2 * seq_len)
    assert bool(jnp.allclose(preds, ref, atol=1e-4, rtol=1e-4)), \
        f"mismatch vs JAX reference (max abs diff {float(jnp.max(jnp.abs(preds - ref)))})"
    print("KERNEL_OK")
</pallas_src>

<mosaic_0001>
module attributes {stable_mosaic.version = 11 : i64} {
  func.func @wavenet_kernel(%arg0: memref<2x18x16xf32, #tpu.memory_space<vmem>>, %arg1: memref<32x32xf32, #tpu.memory_space<vmem>>, %arg2: memref<272x128xf32, #tpu.memory_space<vmem>>, %arg3: memref<1x32xf32, #tpu.memory_space<vmem>>) attributes {dimension_semantics = [], scalar_prefetch = 0 : i64, scratch_operands = 0 : i64, tpu.core_type = #tpu.core_type<tc>} {
    %c168 = arith.constant 168 : index
    %c0 = arith.constant 0 : index
    %0 = vector.load %arg2[%c168, %c0] : memref<272x128xf32, #tpu.memory_space<vmem>>, vector<3x32xf32>
    %1 = vector.extract_strided_slice %0 {offsets = [0, 0], sizes = [1, 16], strides = [1, 1]} : vector<3x32xf32> to vector<1x16xf32>
    %2 = vector.extract_strided_slice %0 {offsets = [1, 0], sizes = [1, 32], strides = [1, 1]} : vector<3x32xf32> to vector<1x32xf32>
    %3 = vector.extract_strided_slice %0 {offsets = [2, 0], sizes = [1, 32], strides = [1, 1]} : vector<3x32xf32> to vector<1x32xf32>
    %c0_0 = arith.constant 0 : index
    %c0_1 = arith.constant 0 : index
    %c0_2 = arith.constant 0 : index
    %4 = vector.load %arg0[%c0_0, %c0_1, %c0_2] : memref<2x18x16xf32, #tpu.memory_space<vmem>>, vector<1x18x16xf32>
    %5 = vector.shape_cast %4 : vector<1x18x16xf32> to vector<18x16xf32>
    %6 = tpu.transpose %5, [1, 0] : vector<18x16xf32> -> vector<16x18xf32>
    %c1 = arith.constant 1 : index
    %c0_3 = arith.constant 0 : index
    %c0_4 = arith.constant 0 : index
    %7 = vector.load %arg0[%c1, %c0_3, %c0_4] : memref<2x18x16xf32, #tpu.memory_space<vmem>>, vector<1x18x16xf32>
    %8 = vector.shape_cast %7 : vector<1x18x16xf32> to vector<18x16xf32>
    %9 = tpu.transpose %8, [1, 0] : vector<18x16xf32> -> vector<16x18xf32>
    %10 = tpu.concatenate %6, %9 in 0 : vector<16x18xf32>, vector<16x18xf32> -> vector<32x18xf32>
    %11 = tpu.iota {dimensions = array<i32: 0>} : vector<32x1xi32>
    %c16_i32 = arith.constant 16 : i32
    %c0_i32 = arith.constant 0 : i32
    %12 = arith.cmpi eq, %c16_i32, %c0_i32 : i32
    %c1_i32 = arith.constant 1 : i32
    %13 = arith.select %12, %c1_i32, %c16_i32 : i32
    %14 = vector.broadcast %13 : i32 to vector<32x1xi32>
    %15 = arith.remsi %11, %14 : vector<32x1xi32>
    %c0_i32_5 = arith.constant 0 : i32
    %16 = vector.broadcast %c0_i32_5 : i32 to vector<32x1xi32>
    %17 = arith.cmpi ne, %15, %16 : vector<32x1xi32>
    %c0_i32_6 = arith.constant 0 : i32
    %18 = vector.broadcast %c0_i32_6 : i32 to vector<32x1xi32>
    %19 = arith.cmpi slt, %15, %18 : vector<32x1xi32>
    %c0_i32_7 = arith.constant 0 : i32
    %20 = arith.cmpi slt, %13, %c0_i32_7 : i32
    %21 = vector.broadcast %20 : i1 to vector<32x1xi1>
    %22 = vector.broadcast %21 : vector<32x1xi1> to vector<32x1xi1>
    %23 = arith.xori %19, %22 : vector<32x1xi1>
    %24 = arith.andi %23, %17 : vector<32x1xi1>
    %25 = vector.broadcast %13 : i32 to vector<32x1xi32>
    %26 = arith.addi %15, %25 : vector<32x1xi32>
    %27 = arith.select %24, %26, %15 : vector<32x1xi1>, vector<32x1xi32>
    %c0_8 = arith.constant 0 : index
    %c0_9 = arith.constant 0 : index
    %28 = vector.load %arg2[%c0_8, %c0_9] : memref<272x128xf32, #tpu.memory_space<vmem>>, vector<18x32xf32>
    %cst = arith.constant dense<0.000000e+00> : vector<32x32xf32>
    %29 = tpu.matmul %10, %28, %cst {dimension_numbers = #tpu.dot_dimension_numbers<[1], [0], [0], [1], [0, 0, 1, 1], [], []>} : vector<32x18xf32>, vector<18x32xf32>, vector<32x32xf32> -> vector<32x32xf32>
    %30 = vector.extract_strided_slice %29 {offsets = [0, 16], sizes = [32, 16], strides = [1, 1]} : vector<32x32xf32> to vector<32x16xf32>
    %c30_i32 = arith.constant 30 : i32
    %31 = tpu.dynamic_rotate %30 by %c30_i32 dim 0 : vector<32x16xf32>, i32 -> vector<32x16xf32>
    %32 = vector.extract_strided_slice %29 {offsets = [0, 0], sizes = [32, 16], strides = [1, 1]} : vector<32x32xf32> to vector<32x16xf32>
    %33 = arith.addf %32, %31 : vector<32x16xf32>
    %34 = vector.broadcast %1 : vector<1x16xf32> to vector<32x16xf32>
    %35 = arith.addf %33, %34 : vector<32x16xf32>
    %cst_10 = arith.constant 0.000000e+00 : f32
    %36 = vector.broadcast %cst_10 : f32 to vector<32x16xf32>
    %37 = arith.maximumf %35, %36 : vector<32x16xf32>
    %c24 = arith.constant 24 : index
    %c0_11 = arith.constant 0 : index
    %38 = vector.load %arg2[%c24, %c0_11] : memref<272x128xf32, #tpu.memory_space<vmem>>, vector<16x32xf32>
    %cst_12 = arith.constant dense<0.000000e+00> : vector<32x32xf32>
    %39 = tpu.matmul %37, %38, %cst_12 {dimension_numbers = #tpu.dot_dimension_numbers<[1], [0], [0], [1], [0, 0, 1, 1], [], []>} : vector<32x16xf32>, vector<16x32xf32>, vector<32x32xf32> -> vector<32x32xf32>
    %40 = vector.broadcast %2 : vector<1x32xf32> to vector<32x32xf32>
    %41 = arith.addf %39, %40 : vector<32x32xf32>
    %cst_13 = arith.constant 0.000000e+00 : f32
    %42 = vector.broadcast %cst_13 : f32 to vector<32x32xf32>
    %43 = arith.maximumf %41, %42 : vector<32x32xf32>
    %c40 = arith.constant 40 : index
    %c0_14 = arith.constant 0 : index
    %44 = vector.load %arg2[%c40, %c0_14] : memref<272x128xf32, #tpu.memory_space<vmem>>, vector<32x64xf32>
    %cst_15 = arith.constant dense<0.000000e+00> : vector<32x64xf32>
    %45 = tpu.matmul %43, %44, %cst_15 {dimension_numbers = #tpu.dot_dimension_numbers<[1], [0], [0], [1], [0, 0, 1, 1], [], []>} : vector<32x32xf32>, vector<32x64xf32>, vector<32x64xf32> -> vector<32x64xf32>
    %46 = vector.extract_strided_slice %45 {offsets = [0, 32], sizes = [32, 32], strides = [1, 1]} : vector<32x64xf32> to vector<32x32xf32>
    %c2_i32 = arith.constant 2 : i32
    %47 = tpu.dynamic_rotate %46 by %c2_i32 dim 0 : vector<32x32xf32>, i32 -> vector<32x32xf32>
    %c14_i32 = arith.constant 14 : i32
    %48 = vector.broadcast %c14_i32 : i32 to vector<32x1xi32>
    %49 = arith.cmpi slt, %27, %48 : vector<32x1xi32>
    %50 = vector.extract_strided_slice %45 {offsets = [0, 0], sizes = [32, 32], strides = [1, 1]} : vector<32x64xf32> to vector<32x32xf32>
    %cst_16 = arith.constant 0.000000e+00 : f32
    %51 = vector.shape_cast %49 : vector<32x1xi1> to vector<32x1xi1>
    %52 = vector.broadcast %51 : vector<32x1xi1> to vector<32x32xi1>
    %53 = vector.broadcast %cst_16 : f32 to vector<32x32xf32>
    %54 = arith.select %52, %50, %53 : vector<32x32xi1>, vector<32x32xf32>
    %c2_i32_17 = arith.constant 2 : i32
    %55 = vector.broadcast %c2_i32_17 : i32 to vector<32x1xi32>
    %56 = arith.cmpi sge, %27, %55 : vector<32x1xi32>
    %cst_18 = arith.constant 0.000000e+00 : f32
    %57 = vector.shape_cast %56 : vector<32x1xi1> to vector<32x1xi1>
    %58 = vector.broadcast %57 : vector<32x1xi1> to vector<32x32xi1>
    %59 = vector.broadcast %cst_18 : f32 to vector<32x32xf32>
    %60 = arith.select %58, %47, %59 : vector<32x32xi1>, vector<32x32xf32>
    %61 = arith.addf %54, %60 : vector<32x32xf32>
    %62 = vector.broadcast %3 : vector<1x32xf32> to vector<32x32xf32>
    %63 = arith.addf %61, %62 : vector<32x32xf32>
    %cst_19 = arith.constant 0.000000e+00 : f32
    %64 = vector.broadcast %cst_19 : f32 to vector<32x32xf32>
    %65 = arith.maximumf %63, %64 : vector<32x32xf32>
    %c72 = arith.constant 72 : index
    %c0_20 = arith.constant 0 : index
    %66 = vector.load %arg2[%c72, %c0_20] : memref<272x128xf32, #tpu.memory_space<vmem>>, vector<64x32xf32>
    %c0_21 = arith.constant 0 : index
    %c0_22 = arith.constant 0 : index
    %67 = vector.load %arg1[%c0_21, %c0_22] : memref<32x32xf32, #tpu.memory_space<vmem>>, vector<32x32xf32>
    %cst_23 = arith.constant dense<0.000000e+00> : vector<64x32xf32>
    %68 = tpu.matmul %66, %67, %cst_23 {dimension_numbers = #tpu.dot_dimension_numbers<[1], [1], [0], [0], [0, 0, 1, 0], [], []>} : vector<64x32xf32>, vector<32x32xf32>, vector<64x32xf32> -> vector<64x32xf32>
    %c176 = arith.constant 176 : index
    %c0_24 = arith.constant 0 : index
    %69 = vector.load %arg2[%c176, %c0_24] : memref<272x128xf32, #tpu.memory_space<vmem>>, vector<64x1xf32>
    %70 = vector.broadcast %69 : vector<64x1xf32> to vector<64x32xf32>
    %71 = arith.addf %68, %70 : vector<64x32xf32>
    %cst_25 = arith.constant 0.000000e+00 : f32
    %72 = vector.broadcast %cst_25 : f32 to vector<64x32xf32>
    %73 = arith.maximumf %71, %72 : vector<64x32xf32>
    %c136 = arith.constant 136 : index
    %c0_26 = arith.constant 0 : index
    %74 = vector.load %arg2[%c136, %c0_26] : memref<272x128xf32, #tpu.memory_space<vmem>>, vector<16x96xf32>
    %75 = vector.extract_strided_slice %74 {offsets = [0, 0], sizes = [16, 16], strides = [1, 1]} : vector<16x96xf32> to vector<16x16xf32>
    %76 = vector.extract_strided_slice %74 {offsets = [0, 16], sizes = [16, 16], strides = [1, 1]} : vector<16x96xf32> to vector<16x16xf32>
    %77 = vector.extract_strided_slice %74 {offsets = [0, 32], sizes = [16, 64], strides = [1, 1]} : vector<16x96xf32> to vector<16x64xf32>
    %cst_27 = arith.constant dense<0.000000e+00> : vector<16x32xf32>
    %78 = tpu.matmul %77, %73, %cst_27 {dimension_numbers = #tpu.dot_dimension_numbers<[1], [0], [0], [1], [0, 0, 1, 1], [], []>} : vector<16x64xf32>, vector<64x32xf32>, vector<16x32xf32> -> vector<16x32xf32>
    %79 = vector.extract_strided_slice %65 {offsets = [0, 0], sizes = [16, 16], strides = [1, 1]} : vector<32x32xf32> to vector<16x16xf32>
    %cst_28 = arith.constant dense<0.000000e+00> : vector<16x16xf32>
    %80 = tpu.matmul %75, %79, %cst_28 {dimension_numbers = #tpu.dot_dimension_numbers<[1], [0], [0], [1], [0, 0, 1, 1], [], []>} : vector<16x16xf32>, vector<16x16xf32>, vector<16x16xf32> -> vector<16x16xf32>
    %81 = vector.extract_strided_slice %65 {offsets = [0, 16], sizes = [16, 16], strides = [1, 1]} : vector<32x32xf32> to vector<16x16xf32>
    %cst_29 = arith.constant dense<0.000000e+00> : vector<16x16xf32>
    %82 = tpu.matmul %76, %81, %cst_29 {dimension_numbers = #tpu.dot_dimension_numbers<[1], [0], [0], [1], [0, 0, 1, 1], [], []>} : vector<16x16xf32>, vector<16x16xf32>, vector<16x16xf32> -> vector<16x16xf32>
    %83 = arith.addf %80, %82 : vector<16x16xf32>
    %84 = vector.extract_strided_slice %65 {offsets = [16, 0], sizes = [16, 16], strides = [1, 1]} : vector<32x32xf32> to vector<16x16xf32>
    %cst_30 = arith.constant dense<0.000000e+00> : vector<16x16xf32>
    %85 = tpu.matmul %75, %84, %cst_30 {dimension_numbers = #tpu.dot_dimension_numbers<[1], [0], [0], [1], [0, 0, 1, 1], [], []>} : vector<16x16xf32>, vector<16x16xf32>, vector<16x16xf32> -> vector<16x16xf32>
    %86 = vector.extract_strided_slice %65 {offsets = [16, 16], sizes = [16, 16], strides = [1, 1]} : vector<32x32xf32> to vector<16x16xf32>
    %cst_31 = arith.constant dense<0.000000e+00> : vector<16x16xf32>
    %87 = tpu.matmul %76, %86, %cst_31 {dimension_numbers = #tpu.dot_dimension_numbers<[1], [0], [0], [1], [0, 0, 1, 1], [], []>} : vector<16x16xf32>, vector<16x16xf32>, vector<16x16xf32> -> vector<16x16xf32>
    %88 = arith.addf %85, %87 : vector<16x16xf32>
    %89 = tpu.concatenate %83, %88 in 1 : vector<16x16xf32>, vector<16x16xf32> -> vector<16x32xf32>
    %90 = arith.addf %89, %78 : vector<16x32xf32>
    %c240 = arith.constant 240 : index
    %c0_32 = arith.constant 0 : index
    %91 = vector.load %arg2[%c240, %c0_32] : memref<272x128xf32, #tpu.memory_space<vmem>>, vector<16x1xf32>
    %92 = vector.broadcast %91 : vector<16x1xf32> to vector<16x32xf32>
    %93 = arith.addf %90, %92 : vector<16x32xf32>
    %cst_33 = arith.constant 0.000000e+00 : f32
    %94 = vector.broadcast %cst_33 : f32 to vector<16x32xf32>
    %95 = arith.maximumf %93, %94 : vector<16x32xf32>
    %c152 = arith.constant 152 : index
    %c0_34 = arith.constant 0 : index
    %96 = vector.load %arg2[%c152, %c0_34] : memref<272x128xf32, #tpu.memory_space<vmem>>, vector<4x16xf32>
    %cst_35 = arith.constant dense<0.000000e+00> : vector<4x32xf32>
    %97 = tpu.matmul %96, %95, %cst_35 {dimension_numbers = #tpu.dot_dimension_numbers<[1], [0], [0], [1], [0, 0, 1, 1], [], []>} : vector<4x16xf32>, vector<16x32xf32>, vector<4x32xf32> -> vector<4x32xf32>
    %c256 = arith.constant 256 : index
    %c0_36 = arith.constant 0 : index
    %98 = vector.load %arg2[%c256, %c0_36] : memref<272x128xf32, #tpu.memory_space<vmem>>, vector<4x1xf32>
    %99 = vector.broadcast %98 : vector<4x1xf32> to vector<4x32xf32>
    %100 = arith.addf %97, %99 : vector<4x32xf32>
    %cst_37 = arith.constant 0.000000e+00 : f32
    %101 = vector.broadcast %cst_37 : f32 to vector<4x32xf32>
    %102 = arith.maximumf %100, %101 : vector<4x32xf32>
    %c160 = arith.constant 160 : index
    %c0_38 = arith.constant 0 : index
    %103 = vector.load %arg2[%c160, %c0_38] : memref<272x128xf32, #tpu.memory_space<vmem>>, vector<1x4xf32>
    %cst_39 = arith.constant dense<0.000000e+00> : vector<1x32xf32>
    %104 = tpu.matmul %103, %102, %cst_39 {dimension_numbers = #tpu.dot_dimension_numbers<[1], [0], [0], [1], [0, 0, 1, 1], [], []>} : vector<1x4xf32>, vector<4x32xf32>, vector<1x32xf32> -> vector<1x32xf32>
    %c264 = arith.constant 264 : index
    %c0_40 = arith.constant 0 : index
    %105 = vector.load %arg2[%c264, %c0_40] : memref<272x128xf32, #tpu.memory_space<vmem>>, vector<1x1xf32>
    %106 = vector.broadcast %105 : vector<1x1xf32> to vector<1x32xf32>
    %107 = arith.addf %104, %106 : vector<1x32xf32>
    %cst_41 = arith.constant 0.000000e+00 : f32
    %108 = vector.broadcast %cst_41 : f32 to vector<1x32xf32>
    %109 = arith.subf %108, %107 : vector<1x32xf32>
    %110 = math.exp %109 : vector<1x32xf32>
    %cst_42 = arith.constant 1.000000e+00 : f32
    %111 = vector.broadcast %cst_42 : f32 to vector<1x32xf32>
    %112 = arith.addf %111, %110 : vector<1x32xf32>
    %113 = tpu.reciprocal %112 : vector<1x32xf32> -> vector<1x32xf32>
    %c0_43 = arith.constant 0 : index
    %c0_44 = arith.constant 0 : index
    %114 = vector.load %arg3[%c0_43, %c0_44] : memref<1x32xf32, #tpu.memory_space<vmem>>, vector<1x32xf32>
    tpu.vector_store %arg3[%c0_43, %c0_44], %113 {strides = array<i32>} : memref<1x32xf32, #tpu.memory_space<vmem>>, vector<1x32xf32>,
    return
  }
}

</mosaic_0001>

<bundles_post_ra>
// kernel: forward_pallas.1
= control target key start
LH: loop header
LB: loop body
LE: loop exit
PB: predicated region body
PF: predicated region fallthrough
CT: control target
= control target key end

     0   :  { %vm156_vm0 = vcmask 1041408   ;;  %s1967_s0 = inlined_call_operand.vmem [shape: f32[2,18,16], index: 0, kind: input, shape index: {}]   ;;  %s1968_s1 = inlined_call_operand.vmem [shape: f32[32,32], index: 1, kind: input, shape index: {}]   ;;  %s1969_s2 = inlined_call_operand.vmem [shape: f32[272,128], index: 2, kind: input, shape index: {}]   ;;  %s1970_s3 = inlined_call_operand.hbm [shape: f32[1,32], index: 3, kind: output, shape index: {}]  }
   0x1   :  { %v16_v0 = vld [vmem:[%s1967_s0] sm:$0xff]  ;;  %v1409_v1 = vld [vmem:[%s1967_s0 + $0x18] sm:$0xff]  ;;  %v17_v2 = vld [vmem:[%s1967_s0 + $0x8] sm:$0xff] }
   0x2   :  { %19 = vxpose.xlu0.b32.start [1/3] (short) (narrow) %v16_v0, 16  ;;  %55 = vxpose.xlu1.b32.start [1/3] (short) (narrow) %v1409_v1, 16  ;;  %v1410_v3 = vld [vmem:[%s1967_s0 + $0x20] sm:$0xff]  ;;  %v142_v4 = vld [vmem:[%s1969_s2 + $0x10] sm:$0x3]  ;;  %v141_v5 = vld [vmem:[%s1969_s2 + $0x8] sm:$0xff] }
   0x3   :  { %1514 = vmatprep.subr.msk.mxu0 %vm156_vm0, %v142_v4 }
   0x4   :  { %8 = vsyncpa [#allocation3], 0  ;;  %1515 = vmatpush3.msk.msra.mxu0 %vm156_vm0, %v142_v4  ;;  %v140_v6 = vld [vmem:[%s1969_s2] sm:$0xff]  ;;  %v18_v7 = vld [vmem:[%s1967_s0 + $0x10] sm:$0x3]  ;;  %vm143_vm1 = vcmask 146432   ;;  %v87_v19 = vlaneseq }
   0x5   :  { %v1411_v8 = vld [vmem:[%s1967_s0 + $0x28] sm:$0x3]  ;;  %1516 = vmatprep.subr.mxu0 %v141_v5  ;;  %v287_v13 = vld [vmem:[%s1969_s2 + $0x20] sm:$0xff]  ;;  %v286_v15 = vld [vmem:[%s1969_s2 + $0x18] sm:$0xff]  ;;  %s1664_s6 = smov 112   ;;  %vm292_vm3 = vcmask 130048  }
   0x6   :  { %20 = vxpose.xlu0.b32.cont [2/3] (short) (narrow) %v17_v2, 16  ;;  %56 = vxpose.xlu1.b32.cont [2/3] (short) (narrow) %v1410_v3, 16  ;;  %v1728_v20 = vshrl.u32 %v87_v19, 7  ;;  %v1734_v23 = vld [vmem:[%s1969_s2 + $0xa8] sm:$0x7]  ;;  %v397_v48 = vld [vmem:[%s1969_s2 + $0x40] sm:$0xff] }
   0x7   :  { %1517 = vmatpush3.msra.mxu0 %v141_v5  ;;  %1526 = vmatprep.subr.mxu1 %v287_v13  ;;  %v396_v49 = vld [vmem:[%s1969_s2 + $0x38] sm:$0xff]  ;;  %v395_v50 = vld [vmem:[%s1969_s2 + $0x30] sm:$0xff]  ;;  %v394_v51 = vld [vmem:[%s1969_s2 + $0x28] sm:$0xff]  ;;  %vm398_vm4 = vcmask 261120   ;;  %s1666_s13 = smov 96   ;;  %vm786_vm10 = vcmask 523264  }
   0x8   :  { %1518 = vmatprep.subr.mxu0 %v140_v6  ;;  %1527 = vmatpush3.msra.mxu1 %v287_v13  ;;  %v276_v22 = vsub.s32 0, %v1728_v20  ;;  %vm265_vm2 = vcmp.lt.s32.totalorder %v1728_v20, 6  ;;  %v580_v52 = vld [vmem:[%s1968_s1 + $0x18] sm:$0xff]  ;;  %v579_v53 = vld [vmem:[%s1968_s1 + $0x10] sm:$0xff]  ;;  %v569_v54 = vld [vmem:[%s1969_s2 + $0x48] sm:$0xff]  ;;  %v290_v57 = vsub.s32 1, %v1728_v20 }
   0x9   :  { %1519 = vmatpush3.msra.mxu0 %v140_v6  ;;  %1528 = vmatprep.subr.mxu1 %v286_v15  ;;  %v578_v55 = vld [vmem:[%s1968_s1 + $0x8] sm:$0xff]  ;;  %v577_v56 = vld [vmem:[%s1968_s1] sm:$0xff]  ;;  %vm516_vm6 = vcmp.lt.s32.totalorder %v1728_v20, 2  ;;  %vm1668_vm11 = vmmov 0   ;;  %vm1314_vm12 = vcmask 1043456   ;;  %vm1310_vm13 = vcmask 31744  }
   0xa   :  { %21 = vxpose.xlu0.b32.end [3/3] (short) (narrow) %v18_v7, 16  ;;  %57 = vxpose.xlu1.b32.end [3/3] (short) (narrow) %v1411_v8, 16  ;;  %v277_v27 = vrot.slane %v1734_v23, %v276_v22  ;;  %v291_v58 = vrot.slane %v1734_v23, %v290_v57  ;;  %v570_v7 = vld [vmem:[%s1969_s2 + $0x50] sm:$0xff]  ;;  %v571_v8 = vld [vmem:[%s1969_s2 + $0x58] sm:$0xff]  ;;  %v576_v13 = vld [vmem:[%s1969_s2 + $0x80] sm:$0xff]  ;;  %s1670_s18 = smov [#allocation2]  }
   0xb   :  { %1529 = vmatpush3.msra.mxu1 %v286_v15  ;;  %1550 = vmatprep.subr.msk.mxu0 %vm398_vm4, %v580_v52  ;;  %v588_v19 = vld [vmem:[%s1969_s2 + $0xe8] sm:$0xff]  ;;  %v586_v22 = vld [vmem:[%s1969_s2 + $0xd8] sm:$0xff]  ;;  %s1401_s19 = sshll.u32 %s1670_s18, 4  ;;  %vm1393_vm14 = vcmask 253952   ;;  %s1402_s19 = int_to_ptr.vmem [resolvable:$true] %s1401_s19 }
   0xc   :  { %1536 = vmatprep.subr.mxu1 %v397_v48  ;;  %s1646_s20 = scalar_lea.vmem %s1402_s19, 32  ;;  %p1647_p1 = scmp.lt.s32.totalorder %s1402_s19, %s1402_s19 }
  0x7e   :  { %v35_v9 = vpop.trf.xlu0  ;;  %v71_v10 = vpop.trf.xlu1 }
  0x7f   :  { %1520 = vmatprep.mubr.msk.f32.mxu0 %vm143_vm1, %v35_v9  ;;  %v572_v9 = vld [vmem:[%s1969_s2 + $0x60] sm:$0xff] }
  0x82   :  { %v36_v11 = vpop.trf.xlu0  ;;  %v72_v12 = vpop.trf.xlu1 }
  0x83   :  { %1521 = vmatmul.mubr.msk.f32.vlgmr.msra.gmra.mxu0 %vm143_vm1, %v36_v11  ;;  %v574_v11 = vld [vmem:[%s1969_s2 + $0x70] sm:$0xff] }
  0x84   :  { %1523 = vmatprep.mubr.msk.f32.mxu0 %vm143_vm1, %v71_v10  ;;  %1551 = vmatpush3.xpose.msk.msra.mxu0 %vm398_vm4, %v580_v52  ;;  %v573_v10 = vld [vmem:[%s1969_s2 + $0x68] sm:$0xff] }
  0x85   :  { %1552 = vmatprep.subr.msk.mxu0 %vm398_vm4, %v579_v53 }
  0x87   :  { %1524 = vmatmul.mubr.msk.f32.gmra.mxu0 %vm143_vm1, %v72_v12  ;;  %v575_v12 = vld [vmem:[%s1969_s2 + $0x78] sm:$0xff] }
  0x88   :  { %1558 = vmatprep.mubr.msk.f32.mxu0 %vm398_vm4, %v569_v54  ;;  %1553 = vmatpush3.xpose.msk.msra.mxu0 %vm398_vm4, %v579_v53 }
  0x89   :  { %1554 = vmatprep.subr.msk.mxu0 %vm398_vm4, %v578_v55 }
  0x8c   :  { %1555 = vmatpush3.xpose.msk.msra.mxu0 %vm398_vm4, %v578_v55 }
  0x8d   :  { %1556 = vmatprep.subr.msk.mxu0 %vm398_vm4, %v577_v56 }
  0x90   :  { %1557 = vmatpush3.xpose.msk.msra.mxu0 %vm398_vm4, %v577_v56 }
  0x93   :  { %1559 = vmatmul.mubr.msk.f32.vlgmr.msra.gmra.mxu0 %vm398_vm4, %v570_v7 }
  0x94   :  { %1561 = vmatprep.mubr.msk.f32.mxu0 %vm398_vm4, %v571_v8 }
  0x97   :  { %1562 = vmatmul.mubr.msk.f32.gmra.mxu0 %vm398_vm4, %v572_v9 }
  0x98   :  { %1564 = vmatprep.mubr.msk.f32.mxu0 %vm398_vm4, %v573_v10 }
  0x9b   :  { %1565 = vmatmul.mubr.msk.f32.gmra.mxu0 %vm398_vm4, %v574_v11 }
  0x9c   :  { %1567 = vmatprep.mubr.msk.f32.mxu0 %vm398_vm4, %v575_v12 }
  0x9f   :  { %1568 = vmatmul.mubr.msk.f32.gmra.mxu0 %vm398_vm4, %v576_v13  ;;  %v1207_v13 = vld [vmem:[%s1969_s2 + $0xf8] sm:$0xff] }
 0x143   :  { %v1522_v14 = vpop.f32.mrf.mxu0 }
 0x144   :  { %251 = vrot.lane.b32.xlu1 %v1522_v14, %s1664_s6 }
 0x145   :  { %v226_v16 = vpop.f32.mrf.mxu0 }
 0x146   :  { %249 = vrot.lane.b32.xlu0 %v226_v16, %s1664_s6 }
 0x147   :  { %v1525_v17 = vpop.f32.mrf.mxu0 }
 0x149   :  { %v236_v18 = vpop.f32.mrf.mxu0 }
 0x14a   :  { %253 = vrot.lane.b32.xlu1 %v236_v18, %s1664_s6 }
 0x14e   :  { %255 = vrot.lane.b32.xlu1 %v1525_v17, %s1664_s6 }
 0x1b6   :  { %v252_v21 = vpop.permute.xlu1 %251 }
 0x1b7   :  { %v262_v25 = vrot.slane %v252_v21, 2  ;;  %v587_v21 = vld [vmem:[%s1969_s2 + $0xe0] sm:$0xff] }
 0x1b8   :  { %v250_v24 = vpop.permute.xlu0 %249 }
 0x1b9   :  { %v261_v26 = vrot.slane %v250_v24, 2  ;;  %v584_v24 = vld [vmem:[%s1969_s2 + $0xc8] sm:$0xff] }
 0x1bb   :  { %v268_v28 = vsel %vm265_vm2, %v261_v26, %v262_v25 }
 0x1bc   :  { %v254_v29 = vpop.permute.xlu1 %253  ;;  %v270_v30 = vadd.f32 %v268_v28, %v226_v16  ;;  %v1853_v28 = vld [vmem:[%s1969_s2 + $0x88] sm:$0xff] }
 0x1bd   :  { %v263_v31 = vrot.slane %v254_v29, 2  ;;  %v581_v29 = vld [vmem:[%s1969_s2 + $0xb0] sm:$0xff] }
 0x1be   :  { %v278_v32 = vadd.f32 %v277_v27, %v270_v30  ;;  %v1862_v30 = vld [vmem:[%s1969_s2 + $0x90] sm:$0xff] }
 0x1bf   :  { %v267_v33 = vsel %vm265_vm2, %v262_v25, %v263_v31  ;;  %v585_v25 = vld [vmem:[%s1969_s2 + $0xd0] sm:$0xff] }
 0x1c0   :  { %v271_v34 = vadd.f32 %v1522_v14, %v267_v33  ;;  %v256_v35 = vpop.permute.xlu1 %255  ;;  %v282_v36 = vmax.f32 %v278_v32, 0.0  ;;  %v1665_v14 = vmov 0   ;;  %v89_v32 = vadd.s32 8, %v1728_v20 }
 0x1c1   :  { %v264_v37 = vrot.slane %v256_v35, 2  ;;  %1636 = vset.pattern.permute.xlu1 %v1665_v14  ;;  %1637 = vset.pattern.permute.xlu0 %v1665_v14  ;;  %v91_v35 = vadd.s32 24, %v1728_v20 }
 0x1c2   :  { %1530 = vmatprep.mubr.msk.f32.mxu1 %vm292_vm3, %v282_v36  ;;  %v279_v38 = vadd.f32 %v277_v27, %v271_v34  ;;  %v103_v34 = vand.u32 15, %v89_v32  ;;  %v1223_v32 = vld [vmem:[%s1969_s2 + $0x100] sm:$0xf] }
 0x1c3   :  { %v266_v39 = vsel %vm265_vm2, %v263_v31, %v264_v37  ;;  %v269_v40 = vsel %vm265_vm2, %v264_v37, %v261_v26  ;;  %v582_v26 = vld [vmem:[%s1969_s2 + $0xb8] sm:$0xff]  ;;  %v1865_v31 = vpop.f32.mrf.mxu0 }
 0x1c4   :  { %v272_v41 = vadd.f32 %v266_v39, %v236_v18  ;;  %v273_v42 = vadd.f32 %v1525_v17, %v269_v40  ;;  %v283_v43 = vmax.f32 %v279_v38, 0.0  ;;  %v559_v38 = vsub.s32 2, %v1728_v20 }
 0x1c5   :  { %v1868_v33 = vpop.f32.mrf.mxu0  ;;  %v90_v39 = vadd.s32 16, %v1728_v20  ;;  %vm522_vm5 = vcmp.lt.s32.totalorder %v103_v34, 14  ;;  %v117_v40 = vand.u32 15, %v91_v35 }
 0x1c6   :  { %1531 = vmatmul.mubr.msk.f32.vlgmr.msra.gmra.mxu1 %vm292_vm3, %v283_v43  ;;  %v280_v44 = vadd.f32 %v277_v27, %v272_v41  ;;  %v281_v45 = vadd.f32 %v277_v27, %v273_v42  ;;  %v583_v27 = vld [vmem:[%s1969_s2 + $0xc0] sm:$0xff] }
 0x1c7   :  { %1537 = vmatpush3.msra.mxu1 %v397_v48  ;;  %v1871_v36 = vpop.f32.mrf.mxu0  ;;  %vm1882_vm7 = vcmp.lt.s32.totalorder %v117_v40, 14 }
 0x1c8   :  { %v284_v46 = vmax.f32 %v280_v44, 0.0  ;;  %v285_v47 = vmax.f32 %v281_v45, 0.0  ;;  %1538 = vmatprep.subr.mxu1 %v396_v49  ;;  %v96_v45 = vand.u32 15, %v1728_v20 }
 0x1c9   :  { %1539 = vmatpush3.msra.mxu1 %v396_v49  ;;  %v1876_v42 = vpop.f32.mrf.mxu0  ;;  %v110_v49 = vand.u32 15, %v90_v39 }
 0x1ca   :  { %1533 = vmatprep.mubr.msk.f32.mxu1 %vm292_vm3, %v284_v46  ;;  %1540 = vmatprep.subr.mxu1 %v395_v50  ;;  %v560_v46 = vrot.slane %v1734_v23, %v559_v38  ;;  %vm537_vm8 = vcmp.ge.s32.totalorder %v96_v45, 2 }
 0x1cb   :  { %1534 = vmatmul.mubr.msk.f32.gmra.mxu1 %vm292_vm3, %v285_v47  ;;  %v1566_v53 = vpop.f32.mrf.mxu0  ;;  %vm539_vm9 = vcmp.ge.s32.totalorder %v110_v49, 2 }
 0x1cc   :  { %1541 = vmatpush3.msra.mxu1 %v395_v50 }
 0x1cd   :  { %1542 = vmatprep.subr.mxu1 %v394_v51 }
 0x1ce   :  { %1543 = vmatpush3.msra.mxu1 %v394_v51 }
 0x286   :  { %v1532_v59 = vpop.f32.mrf.mxu1 }
 0x287   :  { %v377_v60 = vadd.f32 %v1532_v59, %v291_v58 }
 0x288   :  { %v371_v61 = vpop.f32.mrf.mxu1 }
 0x289   :  { %v372_v62 = vadd.f32 %v371_v61, %v291_v58  ;;  %v391_v1 = vmax.f32 %v377_v60, 0.0 }
 0x28b   :  { %v390_v63 = vmax.f32 %v372_v62, 0.0  ;;  %v1535_v0 = vpop.f32.mrf.mxu1 }
 0x28c   :  { %v387_v2 = vadd.f32 %v1535_v0, %v291_v58 }
 0x28d   :  { %v381_v3 = vpop.f32.mrf.mxu1  ;;  %1544 = vmatprep.mubr.msk.f32.mxu1 %vm398_vm4, %v390_v63  ;;  %v751_v63 = vpop.f32.mrf.mxu0 }
 0x28e   :  { %v382_v4 = vadd.f32 %v381_v3, %v291_v58  ;;  %1545 = vmatmul.mubr.msk.f32.vlgmr.msra.gmra.mxu1 %vm398_vm4, %v391_v1  ;;  %v393_v6 = vmax.f32 %v387_v2, 0.0 }
 0x290   :  { %v392_v5 = vmax.f32 %v382_v4, 0.0 }
 0x292   :  { %1547 = vmatprep.mubr.msk.f32.mxu1 %vm398_vm4, %v392_v5  ;;  %v1569_v5 = vpop.f32.mrf.mxu0 }
 0x293   :  { %1548 = vmatmul.mubr.msk.f32.gmra.mxu1 %vm398_vm4, %v393_v6 }
 0x294   :  { %v761_v8 = vpop.f32.mrf.mxu0 }
 0x34e   :  { %v1546_v15 = vpop.f32.mrf.mxu1 }
 0x34f   :  { %502 = vrot.lane.b32.xlu0 %v1546_v15, %s1666_s13  ;;  %v534_v47 = vsel %vm522_vm5, %v1546_v15, 0.0 }
 0x350   :  { %v1820_v16 = vpop.f32.mrf.mxu1 }
 0x351   :  { %500 = vrot.lane.b32.xlu1 %v1820_v16, %s1666_s13 }
 0x353   :  { %v1823_v17 = vpop.f32.mrf.mxu1 }
 0x354   :  { %v536_v23 = vsel %vm1882_vm7, %v1823_v17, 0.0 }
 0x355   :  { %506 = vrot.lane.b32.xlu1 %v1823_v17, %s1666_s13  ;;  %v1826_v18 = vpop.f32.mrf.mxu1 }
 0x356   :  { %504 = vrot.lane.b32.xlu0 %v1826_v18, %s1666_s13 }
 0x359   :  { %626 = vperm.xlu1 %1636, %v588_v19  }
 0x35a   :  { %621 = vperm.xlu0 %1637, %v587_v21  }
 0x35d   :  { %616 = vperm.xlu1 %1636, %v586_v22   ;;  %v1206_v22 = vld [vmem:[%s1969_s2 + $0xf0] sm:$0xff] }
 0x35e   :  { %606 = vperm.xlu0 %1637, %v584_v24  }
 0x361   :  { %611 = vperm.xlu1 %1636, %v585_v25  }
 0x362   :  { %596 = vperm.xlu0 %1637, %v582_v26  }
 0x365   :  { %601 = vperm.xlu1 %1636, %v583_v27  }
 0x366   :  { %782 = vrot.lane.b32.xlu0 %v1853_v28, %s1666_s13 }
 0x369   :  { %591 = vperm.xlu1 %1636, %v581_v29  }
 0x36d   :  { %784 = vrot.lane.b32.xlu1 %v1862_v30, %s1666_s13 }
 0x3c1   :  { %v503_v37 = vpop.permute.xlu0 %502 }
 0x3c2   :  { %v513_v43 = vrot.slane %v503_v37, 6 }
 0x3c3   :  { %v501_v41 = vpop.permute.xlu1 %500 }
 0x3c4   :  { %v512_v44 = vrot.slane %v501_v41, 6 }
 0x3c6   :  { %v519_v48 = vsel %vm516_vm6, %v512_v44, %v513_v43 }
 0x3c7   :  { %v554_v51 = vadd.f32 %v534_v47, %v519_v48  ;;  %v507_v52 = vpop.permute.xlu1 %506 }
 0x3c8   :  { %v515_v54 = vrot.slane %v507_v52, 6  ;;  %v505_v55 = vpop.permute.xlu0 %504 }
 0x3c9   :  { %v514_v56 = vrot.slane %v505_v55, 6  ;;  %v562_v57 = vadd.f32 %v560_v46, %v554_v51 }
 0x3ca   :  { %v520_v58 = vsel %vm516_vm6, %v515_v54, %v512_v44 }
 0x3cb   :  { %v549_v59 = vsel %vm537_vm8, %v520_v58, 0.0  ;;  %v517_v60 = vsel %vm516_vm6, %v514_v56, %v515_v54  ;;  %v518_v61 = vsel %vm516_vm6, %v513_v43, %v514_v56  ;;  %v1895_v62 = vmax.f32 %v562_v57, 0.0 }
 0x3cc   :  { %v556_v0 = vadd.f32 %v536_v23, %v517_v60  ;;  %v553_v1 = vadd.f32 %v549_v59, %v1820_v16  ;;  %v551_v2 = vsel %vm539_vm9, %v518_v61, 0.0  ;;  %v1667_v56 = vmov 0.0  }
 0x3cd   :  { %874 = vrot.lane.b32.xlu0 %v1895_v62, %s1664_s6  ;;  %v555_v7 = vadd.f32 %v551_v2, %v1826_v18 }
 0x3ce   :  { %v561_v3 = vadd.f32 %v560_v46, %v553_v1  ;;  %v564_v4 = vadd.f32 %v560_v46, %v556_v0 }
 0x3cf   :  { %v563_v9 = vadd.f32 %v560_v46, %v555_v7 }
 0x3d0   :  { %v1900_v6 = vmax.f32 %v561_v3, 0.0  ;;  %v1907_v20 = vmax.f32 %v564_v4, 0.0 }
 0x3d1   :  { %866 = vrot.lane.b32.xlu0 %v1853_v28, %s1664_s6  ;;  %v1916_v16 = vmax.f32 %v563_v9, 0.0 }
 0x3d2   :  { %872 = vrot.lane.b32.xlu1 %v1900_v6, %s1664_s6 }
 0x3d4   :  { %v627_v10 = vpop.permute.xlu1 %626 }
 0x3d5   :  { %1040 = vrot.lane.b32.xlu0 %v1907_v20, %s1664_s6  ;;  %v767_v11 = vadd.f32 %v1569_v5, %v627_v10  ;;  %v622_v12 = vpop.permute.xlu0 %621  ;;  %v1222_v10 = vld [vmem:[%s1969_s2 + $0x98] sm:$0xf] }
 0x3d6   :  { %868 = vrot.lane.b32.xlu1 %v1862_v30, %s1664_s6  ;;  %v762_v14 = vadd.f32 %v761_v8, %v622_v12 }
 0x3d7   :  { %v777_v15 = vmax.f32 %v767_v11, 0.0 }
 0x3d8   :  { %v617_v17 = vpop.permute.xlu1 %616  ;;  %v776_v18 = vmax.f32 %v762_v14, 0.0 }
 0x3d9   :  { %1215 = vperm.xlu0 %1637, %v1207_v13   ;;  %v757_v19 = vadd.f32 %v1566_v53, %v617_v17  ;;  %1570 = vmatprep.subr.mxu1 %v777_v15  ;;  %v607_v21 = vpop.permute.xlu0 %606 }
 0x3da   :  { %1038 = vrot.lane.b32.xlu1 %v1916_v16, %s1664_s6  ;;  %1571 = vmatpush3.msra.mxu1 %v777_v15  ;;  %v747_v25 = vadd.f32 %v1871_v36, %v607_v21  ;;  %s1669_s6 = smov 16  }
 0x3db   :  { %v775_v24 = vmax.f32 %v757_v19, 0.0  ;;  %1572 = vmatprep.subr.mxu1 %v776_v18 }
 0x3dc   :  { %v612_v26 = vpop.permute.xlu1 %611  ;;  %1573 = vmatpush3.msra.mxu1 %v776_v18  ;;  %v773_v35 = vmax.f32 %v747_v25, 0.0 }
 0x3dd   :  { %1210 = vperm.xlu0 %1637, %v1206_v22   ;;  %v752_v27 = vadd.f32 %v751_v63, %v612_v26  ;;  %1574 = vmatprep.subr.mxu1 %v775_v24  ;;  %v597_v29 = vpop.permute.xlu0 %596 }
 0x3de   :  { %1575 = vmatpush3.msra.mxu1 %v775_v24  ;;  %v737_v37 = vadd.f32 %v1865_v31, %v597_v29 }
 0x3df   :  { %v774_v34 = vmax.f32 %v752_v27, 0.0 }
 0x3e0   :  { %v602_v38 = vpop.permute.xlu1 %601  ;;  %v771_v41 = vmax.f32 %v737_v37, 0.0 }
 0x3e1   :  { %1226 = vperm.xlu0 %1637, %v1223_v32   ;;  %v742_v36 = vadd.f32 %v1876_v42, %v602_v38  ;;  %1576 = vmatprep.subr.mxu1 %v774_v34  ;;  %v783_v39 = vpop.permute.xlu0 %782 }
 0x3e2   :  { %1577 = vmatpush3.msra.mxu1 %v774_v34  ;;  %1586 = vmatprep.mubr.msk.f32.mxu1 %vm786_vm10, %v783_v39 }
 0x3e3   :  { %v772_v40 = vmax.f32 %v742_v36, 0.0  ;;  %1578 = vmatprep.subr.mxu1 %v773_v35 }
 0x3e4   :  { %v592_v43 = vpop.permute.xlu1 %591  ;;  %1579 = vmatpush3.msra.mxu1 %v773_v35 }
 0x3e5   :  { %v732_v44 = vadd.f32 %v1868_v33, %v592_v43  ;;  %1580 = vmatprep.subr.mxu1 %v772_v40 }
 0x3e6   :  { %1581 = vmatpush3.msra.mxu1 %v772_v40 }
 0x3e7   :  { %v770_v31 = vmax.f32 %v732_v44, 0.0  ;;  %1582 = vmatprep.subr.mxu1 %v771_v41 }
 0x3e8   :  { %1583 = vmatpush3.msra.mxu1 %v771_v41  ;;  %v785_v45 = vpop.permute.xlu1 %784 }
 0x3e9   :  { %1584 = vmatprep.subr.mxu1 %v770_v31 }
 0x3ea   :  { %1585 = vmatpush3.msra.mxu1 %v770_v31 }
 0x3eb   :  { %1587 = vmatmul.mubr.msk.f32.vlgmr.msra.gmra.mxu1 %vm786_vm10, %v785_v45 }
 0x43f   :  { %v875_v42 = vpop.permute.xlu0 %874 }
 0x440   :  { %1589 = vmatprep.subr.mxu1 %v875_v42 }
 0x441   :  { %1590 = vmatpush3.msra.mxu1 %v875_v42 }
 0x443   :  { %v867_v46 = vpop.permute.xlu0 %866 }
 0x444   :  { %v873_v47 = vpop.permute.xlu1 %872  ;;  %1593 = vmatprep.mubr.msk.f32.mxu1 %vm292_vm3, %v867_v46  ;;  %1607 = vmatprep.mubr.msk.f32.mxu0 %vm292_vm3, %v867_v46 }
 0x445   :  { %1591 = vmatprep.subr.mxu1 %v873_v47 }
 0x446   :  { %1592 = vmatpush3.msra.mxu1 %v873_v47 }
 0x447   :  { %1596 = vmatprep.subr.mxu1 %v1895_v62  ;;  %v1041_v33 = vpop.permute.xlu0 %1040 }
 0x448   :  { %v869_v48 = vpop.permute.xlu1 %868  ;;  %1603 = vmatprep.subr.mxu0 %v1041_v33 }
 0x449   :  { %1594 = vmatmul.mubr.msk.f32.vlgmr.msra.gmra.mxu1 %vm292_vm3, %v869_v48  ;;  %1604 = vmatpush3.msra.mxu0 %v1041_v33 }
 0x44a   :  { %1597 = vmatpush3.msra.mxu1 %v1895_v62  ;;  %1600 = vmatprep.mubr.msk.f32.mxu1 %vm292_vm3, %v1853_v28  ;;  %v1304_v62 = vld [vmem:[%s1969_s2 + $0x108] sm:$0x1] }
 0x44b   :  { %1598 = vmatprep.subr.mxu1 %v1900_v6 }
 0x44c   :  { %1599 = vmatpush3.msra.mxu1 %v1900_v6  ;;  %v1039_v49 = vpop.permute.xlu1 %1038 }
 0x44d   :  { %1610 = vmatprep.subr.mxu1 %v1907_v20  ;;  %1601 = vmatmul.mubr.msk.f32.vlgmr.msra.gmra.mxu1 %vm292_vm3, %v1862_v30 }
 0x44e   :  { %1605 = vmatprep.subr.mxu0 %v1039_v49  ;;  %1611 = vmatpush3.msra.mxu1 %v1907_v20 }
 0x44f   :  { %1606 = vmatpush3.msra.mxu0 %v1039_v49  ;;  %1612 = vmatprep.subr.mxu1 %v1916_v16 }
 0x450   :  { %1608 = vmatmul.mubr.msk.f32.vlgmr.msra.gmra.mxu0 %vm292_vm3, %v869_v48  ;;  %1613 = vmatpush3.msra.mxu1 %v1916_v16  ;;  %v1303_v16 = vld [vmem:[%s1969_s2 + $0xa0] sm:$0x1]  ;;  %s1642_s2 = scalar_lea.vmem %s1402_s19, 16 }
 0x451   :  { %1614 = vmatprep.mubr.msk.f32.mxu1 %vm292_vm3, %v1853_v28  ;;  %1617 = vmatprep.subr.mxu0 %v1667_v56  ;;  %p1643_p0 = scmp.ne.s32.totalorder %s1402_s19, %s1642_s2  ;;  %p1648_p2 = scmp.lt.s32.totalorder %s1646_s20, %s1642_s2 }
 0x452   :  { %1615 = vmatmul.mubr.msk.f32.vlgmr.msra.gmra.mxu1 %vm292_vm3, %v1862_v30  ;;  %1624 = vmatprep.subr.mxu1 %v1667_v56 }
 0x453   :  { %1621 = vmatprep.mubr.msk.f32.mxu0 %vm1668_vm11, %v1667_v56  ;;  %1626 = vmatprep.mubr.msk.f32.mxu1 %vm1668_vm11, %v1667_v56  ;;  %p1649_p3 = por %p1648_p2, %p1647_p1 }
 0x454   :  { %v1216_v0 = vpop.permute.xlu0 %1215 }
 0x455   :  { %p1650_p4 = pnand %p1649_p3, %p1643_p0 }
 0x458   :  { %v1211_v20 = vpop.permute.xlu0 %1210 }
 0x45c   :  { %v1227_v11 = vpop.permute.xlu0 %1226 }
 0x4ab   :  { %v1588_v50 = vpop.f32.mrf.mxu1 }
 0x4ad   :  { %v857_v51 = vpop.f32.mrf.mxu1 }
 0x509   :  { %v1595_v52 = vpop.f32.mrf.mxu1 }
 0x50b   :  { %v948_v53 = vpop.f32.mrf.mxu1 }
 0x50d   :  { %v1602_v54 = vpop.f32.mrf.mxu1 }
 0x50e   :  { %v1033_v55 = vadd.f32 %v1602_v54, %v1595_v52 }
 0x50f   :  { %v1027_v57 = vpop.f32.mrf.mxu1 }
 0x510   :  { %v1028_v23 = vadd.f32 %v1027_v57, %v948_v53  ;;  %v1609_v58 = vpop.f32.mrf.mxu0 }
 0x512   :  { %v1616_v59 = vpop.f32.mrf.mxu1  ;;  %v1110_v30 = vpop.f32.mrf.mxu0 }
 0x513   :  { %v1191_v60 = vadd.f32 %v1616_v59, %v1609_v58 }
 0x514   :  { %v1185_v28 = vpop.f32.mrf.mxu1 }
 0x515   :  { %1198 = vrot.lane.b32.xlu1 %v1191_v60, %s1669_s6  ;;  %v1186_v61 = vadd.f32 %v1185_v28, %v1110_v30 }
 0x519   :  { %1196 = vrot.lane.b32.xlu1 %v1186_v61, %s1669_s6 }
 0x51d   :  { %1307 = vperm.xlu1 %1636, %v1304_v62  }
 0x587   :  { %v1199_v63 = vpop.permute.xlu1 %1198 }
 0x588   :  { %v1203_v1 = vsel %vm292_vm3, %v1033_v55, %v1199_v63 }
 0x589   :  { %v1205_v2 = vadd.f32 %v1588_v50, %v1203_v1 }
 0x58b   :  { %v1219_v3 = vadd.f32 %v1216_v0, %v1205_v2  ;;  %v1197_v4 = vpop.permute.xlu1 %1196 }
 0x58c   :  { %v1202_v5 = vsel %vm292_vm3, %v1028_v23, %v1197_v4 }
 0x58d   :  { %v1221_v6 = vmax.f32 %v1219_v3, 0.0  ;;  %v1204_v7 = vadd.f32 %v1202_v5, %v857_v51 }
 0x58f   :  { %v1218_v8 = vadd.f32 %v1211_v20, %v1204_v7  ;;  %1618 = vmatpush3.msra.mxu0 %v1221_v6 }
 0x590   :  { %1619 = vmatprep.subr.mxu0 %v1667_v56 }
 0x591   :  { %v1220_v9 = vmax.f32 %v1218_v8, 0.0 }
 0x593   :  { %1620 = vmatpush3.msra.mxu0 %v1220_v9 }
 0x594   :  { %1622 = vmatmul.mubr.msk.f32.vlgmr.msra.gmra.mxu0 %vm292_vm3, %v1222_v10 }
 0x598   :  { %v1308_v17 = vpop.permute.xlu1 %1307 }
 0x654   :  { %v1298_v12 = vpop.f32.mrf.mxu0 }
 0x655   :  { %v1299_v13 = vadd.f32 %v1298_v12, %v1227_v11 }
 0x656   :  { %v1623_v14 = vpop.f32.mrf.mxu0 }
 0x657   :  { %v1302_v15 = vmax.f32 %v1299_v13, 0.0 }
 0x659   :  { %1625 = vmatpush3.msk.msra.mxu1 %vm1314_vm12, %v1302_v15 }
 0x65a   :  { %1627 = vmatmul.mubr.msk.f32.vlgmr.msra.gmra.mxu1 %vm1310_vm13, %v1303_v16 }
 0x71a   :  { %v1384_v18 = vpop.f32.mrf.mxu1 }
 0x71b   :  { %v1385_v19 = vadd.f32 %v1384_v18, %v1308_v17 }
 0x71c   :  { %v1628_v21 = vpop.f32.mrf.mxu1 }
 0x71d   :  { %v1388_v22 = vsub.f32 0.0, %v1385_v19 }
 0x71f   :  { %v1389_v24 = vmul.f32 1.442695, %v1388_v22 }
 0x721   :  { %1638 = vpow2.f32 %v1389_v24 }
 0x72e   :  { %v1639_v25 = vpop.eup %1638 }
 0x72f   :  { %v1391_v26 = vadd.f32 1.0, %v1639_v25 }
 0x731   :  { %1640 = vrcp.f32 %v1391_v26 }
 0x73e   :  { %v1641_v27 = vpop.eup %1640 }
 0x73f   :  { %1394 = vst.msk [vmem:[#allocation2] sm:$0x1] %vm1393_vm14, %v1641_v27 }
 0x740   :  { %1653 = shalt.err (!%p1650_p4)
}
 0x741   :  { %1404 = dma.vmem_to_hbm [thread:$0]  %s1402_s19, 16, %s1970_s3, [#allocation3]  }
 0x742   :  { %1662 = dma.done.wait [#allocation3], 16  }
 0x743   :  { %1663 = vsyncadd [#allocation3], 4294967280 }
 0x744   :  { %1408 = vsyncpa [#allocation3], 1 }

</bundles_post_ra>
